<compile_context>
chip_gen: v7x
topology: tpu7x:2x2x1
jax: 0.10.0
libtpu: 0.0.40
codegen_flags: <defaults>
</compile_context>

<pallas_src>
import functools

import jax
import jax.numpy as jnp
from jax.experimental import pallas as pl
from jax.experimental.pallas import tpu as pltpu


def catenet_kernel(x_ref, w1_ref, w2_ref, small_ref, o_ref, *, h1_dim, h2_dim):
    # x_ref:     (tm, D)   batch-major input tile (original dtype, e.g. f32)
    # w1_ref:    (H1, D)   compute dtype (bf16 or f32), VMEM-resident
    # w2_ref:    (H2, H1)  compute dtype, VMEM-resident
    # small_ref: (H1+2*H2+1, 1) f32 packed [b1; b2; w3; b3], VMEM-resident
    # o_ref:     (1, tm)   f32, batch on the lane axis (lane-dense store)
    cd = w1_ref.dtype
    x = x_ref[...].astype(cd)                                        # (tm, D)

    # Layer 1: Linear(D, 64) + ReLU.  Contract the D axes of (H1, D) x (tm, D)
    # -> (H1, tm): batch stays on lanes, no wrapper transpose needed.
    h1 = jax.lax.dot_general(
        w1_ref[...], x,
        dimension_numbers=(((1,), (1,)), ((), ())),
        preferred_element_type=jnp.float32)
    b1 = small_ref[pl.ds(0, h1_dim), :].astype(cd)
    # Epilogue in compute dtype (bf16 on v6e/v7x): halves VALU/vreg traffic for
    # the 64 x tm activation and feeds layer 2 with no separate cast pass.
    h1 = jnp.maximum(h1.astype(cd) + b1, 0)                          # (H1, tm)

    # Layer 2: Linear(64, 32) + ReLU (f32 epilogue; feeds the f32 VPU layer 3).
    h2 = jnp.dot(w2_ref[...], h1, preferred_element_type=jnp.float32)
    b2 = small_ref[pl.ds(h1_dim, h2_dim), :]
    h2 = jnp.maximum(h2 + b2, 0.0)                                   # (H2, tm) f32

    # Layer 3: Linear(32, 1) as VPU broadcast-multiply + sublane (XLU) reduce,
    # avoiding a nearly-empty width-1 MXU pass.
    w3 = small_ref[pl.ds(h1_dim + h2_dim, h2_dim), :]                # (H2, 1)
    b3 = small_ref[pl.ds(h1_dim + 2 * h2_dim, 1), :]                 # (1, 1)
    out = jnp.sum(h2 * w3, axis=0, keepdims=True) + b3               # (1, tm)
    o_ref[...] = out.astype(o_ref.dtype)


def _round_up(a, m):
    return ((a + m - 1) // m) * m


def catenet_forward(x, params, *, tm=4096, compute_dtype=jnp.bfloat16,
                    vmem_budget_bytes=24 << 20):
    """x: (N, D) float. params: torch-oriented weights
    w1 (64, D), b1 (64,), w2 (32, 64), b2 (32,), w3 (1, 32), b3 (1,).
    Returns (N, 1) float32."""
    N, D = x.shape
    H1, H2 = params["w1"].shape[0], params["w2"].shape[0]
    assert params["w1"].shape[1] == D and params["w2"].shape[1] == H1

    cd_bytes = jnp.dtype(compute_dtype).itemsize
    x_bytes = jnp.dtype(x.dtype).itemsize
    lane_d = _round_up(D, 128)                       # last dim lane-pads in VMEM

    # --- batch-tile selection -------------------------------------------------
    # (a) multiple of the 128-wide lane axis,
    # (b) no bigger than ceil(N/2) rounded up, so n_steps >= 2 whenever the
    #     batch allows -> both v7x TensorCores get grid steps,
    # (c) halved until the double-buffered x tile + activation temporaries fit
    #     a conservative VMEM budget (safe on v7x's smaller VMEM, large D).
    tm = _round_up(max(128, tm), 128)
    tm = min(tm, max(128, _round_up(pl.cdiv(N, 2), 128)))

    def vmem_est(t):
        x_tiles = 2 * t * lane_d * x_bytes           # double-buffered input tile
        x_cast = t * lane_d * cd_bytes               # in-kernel cast copy
        acts = t * (H1 * 4 + H1 * cd_bytes + 2 * H2 * 4)
        out_tiles = 2 * t * 4
        return x_tiles + x_cast + acts + out_tiles

    while tm > 128 and vmem_est(tm) > vmem_budget_bytes:
        tm = max(128, _round_up(tm // 2, 128))

    n_steps = pl.cdiv(N, tm)
    n_pad = n_steps * tm

    # --- operand prep (x is consumed directly; no transpose/cast round trip) ---
    x_in = x if n_pad == N else jnp.pad(x, ((0, n_pad - N), (0, 0)))
    w1 = params["w1"].astype(compute_dtype)                           # (H1, D)
    w2 = params["w2"].astype(compute_dtype)                           # (H2, H1)
    small = jnp.concatenate(                                          # (H1+2*H2+1, 1)
        [params["b1"].reshape(H1, 1),
         params["b2"].reshape(H2, 1),
         params["w3"].reshape(H2, 1),
         params["b3"].reshape(1, 1)], axis=0).astype(jnp.float32)

    full = lambda shape: pl.BlockSpec(shape, lambda i: (0, 0))        # resident blocks

    flops = 2 * n_pad * (D * H1 + H1 * H2 + H2)
    bytes_accessed = (x_in.size * x_bytes + n_pad * 4
                      + w1.size * cd_bytes + w2.size * cd_bytes + small.size * 4)

    kernel = functools.partial(catenet_kernel, h1_dim=H1, h2_dim=H2)

    out = pl.pallas_call(
        kernel,
        out_shape=jax.ShapeDtypeStruct((1, n_pad), jnp.float32),
        grid_spec=pltpu.PrefetchScalarGridSpec(
            num_scalar_prefetch=0,
            grid=(n_steps,),
            in_specs=[
                pl.BlockSpec((tm, D), lambda i: (i, 0)),              # x tile (batch-major)
                full((H1, D)),                                        # w1
                full((H2, H1)),                                       # w2
                full((H1 + 2 * H2 + 1, 1)),                           # packed b1|b2|w3|b3
            ],
            out_specs=pl.BlockSpec((1, tm), lambda i: (0, i)),        # lane-dense output
        ),
        compiler_params=pltpu.CompilerParams(
            dimension_semantics=("parallel",),
            vmem_limit_bytes=32 << 20,
        ),
        cost_estimate=pl.CostEstimate(
            flops=flops, transcendentals=0, bytes_accessed=bytes_accessed),
    )(x_in, w1, w2, small)

    return out[:, :N].T                                               # (N, 1) f32


def init_params(key, input_dim):
    """Deterministic synthetic parameters, stored in torch's (out, in) orientation."""
    k1, k2, k3, k4, k5, k6 = jax.random.split(key, 6)
    w1 = jax.random.normal(k1, (64, input_dim), jnp.float32) * 0.1
    b1 = jax.random.normal(k2, (64,), jnp.float32) * 0.1
    w2 = jax.random.normal(k3, (32, 64), jnp.float32) * 0.1
    b2 = jax.random.normal(k4, (32,), jnp.float32) * 0.1
    w3 = jax.random.normal(k5, (1, 32), jnp.float32) * 0.1
    b3 = jax.random.normal(k6, (1,), jnp.float32) * 0.1
    return dict(w1=w1, b1=b1, w2=w2, b2=b2, w3=w3, b3=b3)


def catenet_reference(x, p):
    h1 = jnp.maximum(x @ p["w1"].T + p["b1"], 0.0)
    h2 = jnp.maximum(h1 @ p["w2"].T + p["b2"], 0.0)
    return h2 @ p["w3"].T + p["b3"]


if __name__ == "__main__":
    key = jax.random.PRNGKey(0)
    k_x, k_p = jax.random.split(key)

    N, D = 16, 16  # small shapes: batch=16, input_dim=16
    x = jax.random.normal(k_x, (N, D), jnp.float32)
    params = init_params(k_p, D)
    ref = catenet_reference(x, params)

    # Pure-f32 compute path (MXU f32 precision: keep a margin vs 1e-5).
    out_f32 = jax.block_until_ready(
        catenet_forward(x, params, compute_dtype=jnp.float32))
    assert out_f32.shape == (N, 1)
    assert jnp.allclose(out_f32, ref, atol=1e-4, rtol=1e-4), "f32 mismatch vs reference"

    # bf16 compute path (default): loose sanity check.
    out_bf16 = jax.block_until_ready(catenet_forward(x, params))
    assert out_bf16.shape == (N, 1)
    assert jnp.allclose(out_bf16, ref, atol=3e-2, rtol=3e-2), "bf16 mismatch vs reference"

    # Ragged batch + multi-step grid: N=300 -> tm clamps to 256 -> 2 grid steps
    # (exercises the v7x two-TensorCore tiling path and row padding).
    N2 = 300
    x2 = jax.random.normal(k_x, (N2, D), jnp.float32)
    out2 = jax.block_until_ready(
        catenet_forward(x2, params, compute_dtype=jnp.float32))
    ref2 = catenet_reference(x2, params)
    assert out2.shape == (N2, 1)
    assert jnp.allclose(out2, ref2, atol=1e-4, rtol=1e-4), "ragged-batch mismatch"

    print("KERNEL_OK")
</pallas_src>

<mosaic_0001>
module attributes {stable_mosaic.version = 11 : i64} {
  func.func @catenet_kernel(%arg0: i32, %arg1: memref<128x16xf32, #tpu.memory_space<vmem>>, %arg2: memref<64x16xf32, #tpu.memory_space<vmem>>, %arg3: memref<32x64xf32, #tpu.memory_space<vmem>>, %arg4: memref<129x1xf32, #tpu.memory_space<vmem>>, %arg5: memref<1x128xf32, #tpu.memory_space<vmem>>) attributes {dimension_semantics = [#tpu.dimension_semantics<parallel>], iteration_bounds = array<i64: 1>, scalar_prefetch = 0 : i64, scratch_operands = 0 : i64, tpu.core_type = #tpu.core_type<tc>, window_params = [{transform_indices = @transform_0, window_bounds = array<i64: 128, 16>}, {pipeline_mode = #tpu.pipeline_mode<synchronous>, transform_indices = @transform_1, window_bounds = array<i64: 64, 16>}, {pipeline_mode = #tpu.pipeline_mode<synchronous>, transform_indices = @transform_2, window_bounds = array<i64: 32, 64>}, {pipeline_mode = #tpu.pipeline_mode<synchronous>, transform_indices = @transform_3, window_bounds = array<i64: 129, 1>}, {transform_indices = @transform_4, window_bounds = array<i64: 1, 128>}]} {
    %c0 = arith.constant 0 : index
    %c0_0 = arith.constant 0 : index
    %0 = vector.load %arg1[%c0, %c0_0] : memref<128x16xf32, #tpu.memory_space<vmem>>, vector<128x16xf32>
    %c0_1 = arith.constant 0 : index
    %c0_2 = arith.constant 0 : index
    %1 = vector.load %arg2[%c0_1, %c0_2] : memref<64x16xf32, #tpu.memory_space<vmem>>, vector<64x16xf32>
    %cst = arith.constant dense<0.000000e+00> : vector<64x128xf32>
    %2 = tpu.matmul %1, %0, %cst {dimension_numbers = #tpu.dot_dimension_numbers<[1], [1], [0], [0], [0, 0, 1, 0], [], []>} : vector<64x16xf32>, vector<128x16xf32>, vector<64x128xf32> -> vector<64x128xf32>
    %c0_3 = arith.constant 0 : index
    %c0_4 = arith.constant 0 : index
    %3 = vector.load %arg4[%c0_3, %c0_4] : memref<129x1xf32, #tpu.memory_space<vmem>>, vector<64x1xf32>
    %4 = vector.broadcast %3 : vector<64x1xf32> to vector<64x128xf32>
    %5 = arith.addf %2, %4 : vector<64x128xf32>
    %cst_5 = arith.constant 0.000000e+00 : f32
    %6 = vector.broadcast %cst_5 : f32 to vector<64x128xf32>
    %7 = arith.maximumf %5, %6 : vector<64x128xf32>
    %c0_6 = arith.constant 0 : index
    %c0_7 = arith.constant 0 : index
    %8 = vector.load %arg3[%c0_6, %c0_7] : memref<32x64xf32, #tpu.memory_space<vmem>>, vector<32x64xf32>
    %cst_8 = arith.constant dense<0.000000e+00> : vector<32x128xf32>
    %9 = tpu.matmul %8, %7, %cst_8 {dimension_numbers = #tpu.dot_dimension_numbers<[1], [0], [0], [1], [0, 0, 1, 1], [], []>} : vector<32x64xf32>, vector<64x128xf32>, vector<32x128xf32> -> vector<32x128xf32>
    %c64 = arith.constant 64 : index
    %c0_9 = arith.constant 0 : index
    %10 = vector.load %arg4[%c64, %c0_9] : memref<129x1xf32, #tpu.memory_space<vmem>>, vector<32x1xf32>
    %11 = vector.broadcast %10 : vector<32x1xf32> to vector<32x128xf32>
    %12 = arith.addf %9, %11 : vector<32x128xf32>
    %cst_10 = arith.constant 0.000000e+00 : f32
    %13 = vector.broadcast %cst_10 : f32 to vector<32x128xf32>
    %14 = arith.maximumf %12, %13 : vector<32x128xf32>
    %c96 = arith.constant 96 : index
    %c0_11 = arith.constant 0 : index
    %15 = vector.load %arg4[%c96, %c0_11] : memref<129x1xf32, #tpu.memory_space<vmem>>, vector<32x1xf32>
    %c128 = arith.constant 128 : index
    %c0_12 = arith.constant 0 : index
    %16 = vector.load %arg4[%c128, %c0_12] : memref<129x1xf32, #tpu.memory_space<vmem>>, vector<1x1xf32>
    %17 = vector.broadcast %15 : vector<32x1xf32> to vector<32x128xf32>
    %18 = arith.mulf %14, %17 : vector<32x128xf32>
    %cst_13 = arith.constant dense<0.000000e+00> : vector<128xf32>
    %19 = vector.multi_reduction <add>, %18, %cst_13 [0] : vector<32x128xf32> to vector<128xf32>
    %20 = vector.shape_cast %19 : vector<128xf32> to vector<1x128xf32>
    %21 = vector.broadcast %16 : vector<1x1xf32> to vector<1x128xf32>
    %22 = arith.addf %20, %21 : vector<1x128xf32>
    %c0_14 = arith.constant 0 : index
    %c0_15 = arith.constant 0 : index
    %23 = vector.load %arg5[%c0_14, %c0_15] : memref<1x128xf32, #tpu.memory_space<vmem>>, vector<1x128xf32>
    tpu.vector_store %arg5[%c0_14, %c0_15], %22 {strides = array<i32>} : memref<1x128xf32, #tpu.memory_space<vmem>>, vector<1x128xf32>,
    return
  }
  func.func @transform_0(%arg0: i32) -> (i32, i32) {
    %c0_i32 = arith.constant 0 : i32
    %c0_i32_0 = arith.constant 0 : i32
    return %arg0, %c0_i32 : i32, i32
  }
  func.func @transform_1(%arg0: i32) -> (i32, i32) {
    %c0_i32 = arith.constant 0 : i32
    %c0_i32_0 = arith.constant 0 : i32
    %c0_i32_1 = arith.constant 0 : i32
    return %c0_i32, %c0_i32_0 : i32, i32
  }
  func.func @transform_2(%arg0: i32) -> (i32, i32) {
    %c0_i32 = arith.constant 0 : i32
    %c0_i32_0 = arith.constant 0 : i32
    %c0_i32_1 = arith.constant 0 : i32
    return %c0_i32, %c0_i32_0 : i32, i32
  }
  func.func @transform_3(%arg0: i32) -> (i32, i32) {
    %c0_i32 = arith.constant 0 : i32
    %c0_i32_0 = arith.constant 0 : i32
    %c0_i32_1 = arith.constant 0 : i32
    return %c0_i32, %c0_i32_0 : i32, i32
  }
  func.func @transform_4(%arg0: i32) -> (i32, i32) {
    %c0_i32 = arith.constant 0 : i32
    %c0_i32_0 = arith.constant 0 : i32
    return %c0_i32, %arg0 : i32, i32
  }
}

</mosaic_0001>

<bundles_post_ra>
// kernel: tpu_custom_call.1
= control target key start
LH: loop header
LB: loop body
LE: loop exit
PB: predicated region body
PF: predicated region fallthrough
CT: control target
= control target key end

     0   :  { %vm90_vm0 = vcmask 130048   ;;  %v687_v6 = vmov 0   ;;  %s911_s0 = inlined_call_operand.vmem [shape: f32[128,16], index: 0, kind: input, shape index: {}]   ;;  %s912_s1 = inlined_call_operand.vmem [shape: f32[64,16], index: 1, kind: input, shape index: {}]   ;;  %s913_s2 = inlined_call_operand.vmem [shape: f32[32,64], index: 2, kind: input, shape index: {}]   ;;  %s914_s3 = inlined_call_operand.vmem [shape: f32[129,1], index: 3, kind: input, shape index: {}]   ;;  %s915_s4 = inlined_call_operand.hbm [shape: f32[1,128], index: 4, kind: output, shape index: {}]  }
   0x1   :  { %v18_v0 = vld [vmem:[%s911_s0] sm:$0xff]  ;;  %v19_v1 = vld [vmem:[%s911_s0 + $0x8] sm:$0xff]  ;;  %v20_v2 = vld [vmem:[%s911_s0 + $0x10] sm:$0xff]  ;;  %661 = vset.pattern.permute.xlu0 %v687_v6  ;;  %662 = vset.pattern.permute.xlu1 %v687_v6 }
   0x2   :  { %v595_v3 = vpack.c.bf16 %v19_v1, %v18_v0  ;;  %vm725_vm1 = vmpackc.low %vm90_vm0, %vm90_vm0  ;;  %v21_v5 = vld [vmem:[%s911_s0 + $0x18] sm:$0xff]  ;;  %v34_v8 = vld [vmem:[%s912_s1] sm:$0xff] }
   0x3   :  { %v601_v7 = vpack.c.bf16 %v21_v5, %v20_v2  ;;  %v22_v9 = vld [vmem:[%s911_s0 + $0x20] sm:$0xff]  ;;  %v23_v10 = vld [vmem:[%s911_s0 + $0x28] sm:$0xff]  ;;  %561 = vmatprep.mubr.msk.f32.mxu0 %vm90_vm0, %v34_v8  ;;  %v44_v13 = vld [vmem:[%s914_s3 + $0x10] sm:$0xff] }
   0x4   :  { %597 = vmatprep.subr.msk.bf16.mxu0 %vm725_vm1, %v595_v3  ;;  %v42_v11 = vld [vmem:[%s914_s3] sm:$0xff]  ;;  %v607_v12 = vpack.c.bf16 %v23_v10, %v22_v9  ;;  %v43_v14 = vld [vmem:[%s914_s3 + $0x8] sm:$0xff]  ;;  %62 = vperm.xlu1 %662, %v44_v13   ;;  %v45_v15 = vld [vmem:[%s914_s3 + $0x18] sm:$0xff] }
   0x5   :  { %600 = vmatpush3.bf16.xpose.msk.msra.mxu0 %vm725_vm1, %v595_v3  ;;  %52 = vperm.xlu0 %661, %v42_v11   ;;  %v24_v16 = vld [vmem:[%s911_s0 + $0x30] sm:$0xff]  ;;  %v25_v17 = vld [vmem:[%s911_s0 + $0x38] sm:$0xff]  ;;  %v46_v18 = vld [vmem:[%s914_s3 + $0x20] sm:$0xff] }
   0x6   :  { %603 = vmatprep.subr.msk.bf16.mxu0 %vm725_vm1, %v601_v7 }
   0x8   :  { %67 = vperm.xlu1 %662, %v45_v15  }
   0x9   :  { %57 = vperm.xlu0 %661, %v43_v14  }
   0xd   :  { %606 = vmatpush3.bf16.xpose.msk.msra.mxu0 %vm725_vm1, %v601_v7 }
   0xe   :  { %609 = vmatprep.subr.msk.bf16.mxu0 %vm725_vm1, %v607_v12 }
   0xf   :  { %9 = vsyncpa [#allocation3], 0  ;;  %v47_v19 = vld [vmem:[%s914_s3 + $0x28] sm:$0xff]  ;;  %v613_v20 = vpack.c.bf16 %v25_v17, %v24_v16  ;;  %72 = vperm.xlu0 %661, %v46_v18   ;;  %v48_v21 = vld [vmem:[%s914_s3 + $0x30] sm:$0xff]  ;;  %vm304_vm2 = vcmask 523264  }
  0x10   :  { %77 = vperm.xlu1 %662, %v47_v19   ;;  %v49_v22 = vld [vmem:[%s914_s3 + $0x38] sm:$0xff]  ;;  %v26_v23 = vld [vmem:[%s911_s0 + $0x40] sm:$0xff]  ;;  %v27_v24 = vld [vmem:[%s911_s0 + $0x48] sm:$0xff] }
  0x11   :  { %v280_v25 = vld [vmem:[%s914_s3 + $0x40] sm:$0xff]  ;;  %v281_v26 = vld [vmem:[%s914_s3 + $0x48] sm:$0xff]  ;;  %v619_v27 = vpack.c.bf16 %v27_v24, %v26_v23  ;;  %v282_v28 = vld [vmem:[%s914_s3 + $0x50] sm:$0xff] }
  0x12   :  { %v283_v29 = vld [vmem:[%s914_s3 + $0x58] sm:$0xff]  ;;  %v28_v30 = vld [vmem:[%s911_s0 + $0x50] sm:$0xff]  ;;  %v406_v32 = vld [vmem:[%s914_s3 + $0x60] sm:$0xff] }
  0x13   :  { %82 = vperm.xlu0 %661, %v48_v21   ;;  %v29_v31 = vld [vmem:[%s911_s0 + $0x58] sm:$0xff]  ;;  %v407_v33 = vld [vmem:[%s914_s3 + $0x68] sm:$0xff]  ;;  %v408_v35 = vld [vmem:[%s914_s3 + $0x70] sm:$0xff] }
  0x14   :  { %87 = vperm.xlu1 %662, %v49_v22   ;;  %v625_v34 = vpack.c.bf16 %v29_v31, %v28_v30  ;;  %v409_v36 = vld [vmem:[%s914_s3 + $0x78] sm:$0xff]  ;;  %v30_v37 = vld [vmem:[%s911_s0 + $0x60] sm:$0xff]  ;;  %v31_v38 = vld [vmem:[%s911_s0 + $0x68] sm:$0xff] }
  0x15   :  { %612 = vmatpush3.bf16.xpose.msk.msra.mxu0 %vm725_vm1, %v607_v12  ;;  %v410_v39 = vld [vmem:[%s914_s3 + $0x80] sm:$0x1]  ;;  %v631_v40 = vpack.c.bf16 %v31_v38, %v30_v37  ;;  %v32_v41 = vld [vmem:[%s911_s0 + $0x70] sm:$0xff]  ;;  %v33_v42 = vld [vmem:[%s911_s0 + $0x78] sm:$0xff] }
  0x16   :  { %615 = vmatprep.subr.msk.bf16.mxu0 %vm725_vm1, %v613_v20  ;;  %v637_v43 = vpack.c.bf16 %v33_v42, %v32_v41  ;;  %v35_v44 = vld [vmem:[%s912_s1 + $0x8] sm:$0xff]  ;;  %v36_v45 = vld [vmem:[%s912_s1 + $0x10] sm:$0xff]  ;;  %v37_v46 = vld [vmem:[%s912_s1 + $0x18] sm:$0xff] }
  0x17   :  { %286 = vperm.xlu0 %661, %v280_v25   ;;  %v38_v47 = vld [vmem:[%s912_s1 + $0x20] sm:$0xff]  ;;  %v39_v48 = vld [vmem:[%s912_s1 + $0x28] sm:$0xff]  ;;  %v40_v49 = vld [vmem:[%s912_s1 + $0x30] sm:$0xff] }
  0x18   :  { %291 = vperm.xlu1 %662, %v281_v26   ;;  %v41_v50 = vld [vmem:[%s912_s1 + $0x38] sm:$0xff]  ;;  %v276_v51 = vld [vmem:[%s913_s2] sm:$0xff]  ;;  %v277_v24 = vld [vmem:[%s913_s2 + $0x8] sm:$0xff] }
  0x19   :  { %589 = vmatprep.mubr.msk.f32.mxu1 %vm304_vm2, %v276_v51  ;;  %v278_v25 = vld [vmem:[%s913_s2 + $0x10] sm:$0xff]  ;;  %v279_v26 = vld [vmem:[%s913_s2 + $0x18] sm:$0xff]  ;;  %s688_s2 = smov [#allocation2]  }
  0x1a   :  { %s457_s24 = sshll.u32 %s688_s2, 4  ;;  %s458_s24 = int_to_ptr.vmem [resolvable:$true] %s457_s24 }
  0x1b   :  { %296 = vperm.xlu0 %661, %v282_v28   ;;  %s663_s25 = scalar_lea.vmem %s458_s24, 16  ;;  %s667_s26 = scalar_lea.vmem %s458_s24, 32 }
  0x1c   :  { %301 = vperm.xlu1 %662, %v283_v29   ;;  %p664_p0 = scmp.ne.s32.totalorder %s458_s24, %s663_s25  ;;  %p668_p1 = scmp.lt.s32.totalorder %s458_s24, %s458_s24 }
  0x1d   :  { %618 = vmatpush3.bf16.xpose.msk.msra.mxu0 %vm725_vm1, %v613_v20  ;;  %p669_p2 = scmp.lt.s32.totalorder %s667_s26, %s663_s25 }
  0x1e   :  { %621 = vmatprep.subr.msk.bf16.mxu0 %vm725_vm1, %v619_v27 }
  0x1f   :  { %413 = vperm.xlu0 %661, %v406_v32   ;;  %p670_p3 = por %p669_p2, %p668_p1 }
  0x20   :  { %418 = vperm.xlu1 %662, %v407_v33  }
  0x21   :  { %p671_p4 = pnand %p670_p3, %p664_p0 }
  0x23   :  { %423 = vperm.xlu0 %661, %v408_v35  }
  0x24   :  { %428 = vperm.xlu1 %662, %v409_v36  }
  0x25   :  { %624 = vmatpush3.bf16.xpose.msk.msra.mxu0 %vm725_vm1, %v619_v27 }
  0x26   :  { %627 = vmatprep.subr.msk.bf16.mxu0 %vm725_vm1, %v625_v34 }
  0x27   :  { %446 = vperm.xlu0 %661, %v410_v39  }
  0x2d   :  { %630 = vmatpush3.bf16.xpose.msk.msra.mxu0 %vm725_vm1, %v625_v34 }
  0x2e   :  { %633 = vmatprep.subr.msk.bf16.mxu0 %vm725_vm1, %v631_v40 }
  0x35   :  { %636 = vmatpush3.bf16.xpose.msk.msra.mxu0 %vm725_vm1, %v631_v40 }
  0x36   :  { %639 = vmatprep.subr.msk.bf16.mxu0 %vm725_vm1, %v637_v43 }
  0x3d   :  { %642 = vmatpush3.bf16.xpose.msk.msra.mxu0 %vm725_vm1, %v637_v43 }
  0x44   :  { %562 = vmatmul.mubr.msk.f32.vlgmr.msra.gmra.mrb[0].mxu0 %vm90_vm0, %v35_v44 }
  0x45   :  { %564 = vmatprep.mubr.msk.f32.mxu0 %vm90_vm0, %v36_v45 }
  0x48   :  { %565 = vmatmul.mubr.msk.f32.gmra.mrb[2].mxu0 %vm90_vm0, %v37_v46 }
  0x49   :  { %567 = vmatprep.mubr.msk.f32.mxu0 %vm90_vm0, %v38_v47 }
  0x4c   :  { %568 = vmatmul.mubr.msk.f32.gmra.mrb[4].mxu0 %vm90_vm0, %v39_v48 }
  0x4d   :  { %570 = vmatprep.mubr.msk.f32.mxu0 %vm90_vm0, %v40_v49 }
  0x50   :  { %571 = vmatmul.mubr.msk.f32.gmra.mrb[6].mxu0 %vm90_vm0, %v41_v50 }
  0x83   :  { %v63_v53 = vpop.permute.xlu1 %62 }
  0x84   :  { %v53_v52 = vpop.permute.xlu0 %52 }
  0x87   :  { %v68_v55 = vpop.permute.xlu1 %67 }
  0x88   :  { %v58_v54 = vpop.permute.xlu0 %57 }
  0x8e   :  { %v73_v4 = vpop.permute.xlu0 %72 }
  0x8f   :  { %v78_v1 = vpop.permute.xlu1 %77 }
  0x92   :  { %v83_v16 = vpop.permute.xlu0 %82 }
  0x93   :  { %v88_v13 = vpop.permute.xlu1 %87 }
  0x96   :  { %v287_v27 = vpop.permute.xlu0 %286 }
  0x97   :  { %v292_v28 = vpop.permute.xlu1 %291 }
  0x9a   :  { %v297_v29 = vpop.permute.xlu0 %296 }
  0x9b   :  { %v302_v30 = vpop.permute.xlu1 %301 }
  0x9e   :  { %v414_v35 = vpop.permute.xlu0 %413 }
  0x9f   :  { %v419_v37 = vpop.permute.xlu1 %418 }
  0xa2   :  { %v424_v48 = vpop.permute.xlu0 %423 }
  0xa3   :  { %v429_v50 = vpop.permute.xlu1 %428 }
 0x117   :  { %v563_v56 = vpop.f32.mrb[0].mxu0 }
 0x118   :  { %v235_v57 = vadd.f32 %v563_v56, %v58_v54  ;;  %v229_v58 = vpop.f32.mrb[1].mxu0 }
 0x119   :  { %v230_v59 = vadd.f32 %v229_v58, %v53_v52 }
 0x11a   :  { %v269_v60 = vmax.f32 %v235_v57, 0.0 }
 0x11b   :  { %v268_v61 = vmax.f32 %v230_v59, 0.0  ;;  %v566_v62 = vpop.f32.mrb[2].mxu0 }
 0x11c   :  { %v245_v63 = vadd.f32 %v566_v62, %v68_v55  ;;  %v239_v0 = vpop.f32.mrb[3].mxu0 }
 0x11d   :  { %v240_v2 = vadd.f32 %v239_v0, %v63_v53  ;;  %v643_v3 = vpack.c.bf16 %v269_v60, %v268_v61  ;;  %v447_v60 = vpop.permute.xlu0 %446 }
 0x11e   :  { %v271_v5 = vmax.f32 %v245_v63, 0.0 }
 0x11f   :  { %v270_v6 = vmax.f32 %v240_v2, 0.0  ;;  %v569_v7 = vpop.f32.mrb[4].mxu0  ;;  %644 = vmatprep.subr.bf16.mxu1 %v643_v3 }
 0x120   :  { %v255_v8 = vadd.f32 %v569_v7, %v78_v1  ;;  %v249_v9 = vpop.f32.mrb[5].mxu0  ;;  %646 = vmatpush3.bf16.msra.mxu1 %v643_v3 }
 0x121   :  { %v647_v10 = vpack.c.bf16 %v271_v5, %v270_v6  ;;  %v250_v11 = vadd.f32 %v249_v9, %v73_v4 }
 0x122   :  { %v273_v12 = vmax.f32 %v255_v8, 0.0 }
 0x123   :  { %v272_v14 = vmax.f32 %v250_v11, 0.0  ;;  %v572_v15 = vpop.f32.mrb[6].mxu0  ;;  %648 = vmatprep.subr.bf16.mxu1 %v647_v10 }
 0x124   :  { %v265_v17 = vadd.f32 %v572_v15, %v88_v13  ;;  %v259_v18 = vpop.f32.mrb[7].mxu0  ;;  %650 = vmatpush3.bf16.msra.mxu1 %v647_v10 }
 0x125   :  { %v651_v19 = vpack.c.bf16 %v273_v12, %v272_v14  ;;  %v260_v20 = vadd.f32 %v259_v18, %v83_v16 }
 0x126   :  { %v275_v21 = vmax.f32 %v265_v17, 0.0 }
 0x127   :  { %v274_v22 = vmax.f32 %v260_v20, 0.0  ;;  %652 = vmatprep.subr.bf16.mxu1 %v651_v19 }
 0x128   :  { %654 = vmatpush3.bf16.msra.mxu1 %v651_v19 }
 0x129   :  { %v655_v23 = vpack.c.bf16 %v275_v21, %v274_v22 }
 0x12b   :  { %656 = vmatprep.subr.bf16.mxu1 %v655_v23 }
 0x12c   :  { %658 = vmatpush3.bf16.msra.mxu1 %v655_v23 }
 0x12f   :  { %590 = vmatmul.mubr.msk.f32.vlgmr.msra.gmra.mrb[0].mxu1 %vm304_vm2, %v277_v24 }
 0x130   :  { %592 = vmatprep.mubr.msk.f32.mxu1 %vm304_vm2, %v278_v25 }
 0x133   :  { %593 = vmatmul.mubr.msk.f32.gmra.mrb[2].mxu1 %vm304_vm2, %v279_v26 }
 0x202   :  { %v591_v31 = vpop.f32.mrb[0].mxu1 }
 0x203   :  { %v389_v32 = vadd.f32 %v591_v31, %v292_v28  ;;  %v383_v33 = vpop.f32.mrb[1].mxu1 }
 0x204   :  { %v384_v34 = vadd.f32 %v383_v33, %v287_v27 }
 0x205   :  { %v403_v36 = vmax.f32 %v389_v32, 0.0 }
 0x206   :  { %v402_v38 = vmax.f32 %v384_v34, 0.0  ;;  %v594_v39 = vpop.f32.mrb[2].mxu1 }
 0x207   :  { %v432_v40 = vmul.f32 %v419_v37, %v403_v36  ;;  %v399_v41 = vadd.f32 %v594_v39, %v302_v30  ;;  %v393_v42 = vpop.f32.mrb[3].mxu1 }
 0x208   :  { %v431_v43 = vmul.f32 %v414_v35, %v402_v38  ;;  %v394_v44 = vadd.f32 %v393_v42, %v297_v29 }
 0x209   :  { %v405_v46 = vmax.f32 %v399_v41, 0.0 }
 0x20a   :  { %v435_v45 = vadd.f32 %v432_v40, %v431_v43  ;;  %v404_v47 = vmax.f32 %v394_v44, 0.0 }
 0x20b   :  { %v434_v51 = vmul.f32 %v429_v50, %v405_v46 }
 0x20c   :  { %v433_v49 = vmul.f32 %v424_v48, %v404_v47 }
 0x20e   :  { %v436_v52 = vadd.f32 %v435_v45, %v433_v49 }
 0x210   :  { %v437_v53 = vadd.f32 %v436_v52, %v434_v51 }
 0x212   :  { %v438_v54 = vrot.slane %v437_v53, 4 }
 0x214   :  { %v439_v55 = vadd.f32 %v438_v54, %v437_v53 }
 0x216   :  { %v440_v56 = vrot.slane %v439_v55, 2 }
 0x218   :  { %v441_v57 = vadd.f32 %v440_v56, %v439_v55 }
 0x21a   :  { %v442_v58 = vrot.slane %v441_v57, 1 }
 0x21c   :  { %v443_v59 = vadd.f32 %v442_v58, %v441_v57 }
 0x21e   :  { %v449_v61 = vadd.f32 %v447_v60, %v443_v59 }
 0x220   :  { %450 = vst [vmem:[#allocation2] sm:$0x1] %v449_v61 }
 0x221   :  { %674 = shalt.err (!%p671_p4)
}
 0x222   :  { %s675_s29 = scalar_lea.hbm %s915_s4, 16 }
 0x223   :  { %p676_p5 = scmp.ne.s32.totalorder %s915_s4, %s675_s29  ;;  %p679_p6 = scmp.lt.u32.totalorder %s675_s29, %s915_s4 }
 0x225   :  { %p681_p7 = pnand %p679_p6, %p676_p5 }
 0x227   :  { %684 = shalt.err (!%p681_p7)
}
 0x228   :  { %460 = dma.vmem_to_hbm [thread:$0]  %s458_s24, 16, %s915_s4, [#allocation3]  }
 0x229   :  { %685 = dma.done.wait [#allocation3], 16  }
 0x22a   :  { %686 = vsyncadd [#allocation3], 4294967280 }
 0x22b   :  { %464 = vsyncpa [#allocation3], 1 }

</bundles_post_ra>
